<compile_context>
chip_gen: v6e
topology: v6e:2x2x1
jax: 0.10.0
libtpu: 0.0.40
codegen_flags: <defaults>
</compile_context>

<pallas_src>
import jax
import jax.numpy as jnp
from jax.experimental import pallas as pl
from jax.experimental.pallas import tpu as pltpu


# Largest batch handled by the gridless (whole-array-resident) path.
# Lane-dense (2,B)+(1,B) f32 pads sublanes to 8 -> ~64*B bytes of VMEM, so
# 2^18 rows is ~16 MiB: safely under the scoped VMEM limit on v5e/v6e (128 MiB
# physical) and v7x (64 MiB physical, 32 MiB scoped default).
_MAX_GRIDLESS_COLS = 1 << 18
_LANE_TILE = 1024  # multiple of 128 -> unmasked lane-dense loads/stores


def linear_kernel(wb_ref, x_ref, o_ref):
    # wb_ref: (3,)       f32 in SMEM  -> [w0, w1, bias]
    # x_ref : (2, T)     f32 in VMEM  -> batch on the lane axis
    # o_ref : (1, T)     f32 in VMEM
    w0 = wb_ref[0]
    w1 = wb_ref[1]
    b = wb_ref[2]
    # Pure VPU: sublane-indexed loads, scalar-broadcast FMAs, lane-dense store.
    o_ref[...] = x_ref[0:1, :] * w0 + x_ref[1:2, :] * w1 + b


def linear_pallas(x, w, b, *, max_gridless_cols=None):
    """y = x @ w.T + b  (nn.Linear(2, 1)) via a Pallas TPU kernel.

    x: (B, 2) float32
    w: (1, 2) float32   (PyTorch layout: (out_features, in_features))
    b: (1,)   float32
    returns (B, 1) float32
    """
    B, IN = x.shape
    OUT, IN2 = w.shape
    assert IN == 2 and IN2 == 2 and OUT == 1, "ModelA is nn.Linear(2, 1)"
    if max_gridless_cols is None:
        max_gridless_cols = _MAX_GRIDLESS_COLS

    # Fused scalar operand [w0, w1, bias] -> SMEM.
    wb = jnp.concatenate([w.reshape(-1), b.reshape(-1)]).astype(jnp.float32)  # (3,)
    # Lane-dense layout: batch on the lane axis. Transpose happens in the
    # wrapper (plain XLA), not inside the kernel.
    x_t = x.astype(jnp.float32).T  # (2, B)

    if B <= max_gridless_cols:
        # Gridless: whole arrays resident, single invocation, no pipeline
        # machinery for a <50-cycle body.
        y_t = pl.pallas_call(
            linear_kernel,
            out_shape=jax.ShapeDtypeStruct((OUT, B), jnp.float32),
            in_specs=[
                pl.BlockSpec(memory_space=pltpu.MemorySpace.SMEM),  # fused w/b scalars
                pl.BlockSpec(memory_space=pltpu.MemorySpace.VMEM),  # x (2, B)
            ],
            out_specs=pl.BlockSpec(memory_space=pltpu.MemorySpace.VMEM),
        )(wb, x_t)
        return y_t.reshape(B, OUT)

    # Large-B fallback: 1-D parallel grid over lane tiles. Keeps the gridless
    # design from blowing past v7x's smaller VMEM and lets its 2 TensorCores
    # split the batch.
    tile = _LANE_TILE
    nt = pl.cdiv(B, tile)
    b_pad = nt * tile
    if b_pad != B:
        x_t = jnp.pad(x_t, ((0, 0), (0, b_pad - B)))  # padded cols discarded below

    y_t = pl.pallas_call(
        linear_kernel,
        out_shape=jax.ShapeDtypeStruct((OUT, b_pad), jnp.float32),
        grid=(nt,),
        in_specs=[
            pl.BlockSpec(memory_space=pltpu.MemorySpace.SMEM),      # fused w/b scalars
            pl.BlockSpec((IN, tile), lambda i: (0, i)),             # x tile (2, 1024)
        ],
        out_specs=pl.BlockSpec((OUT, tile), lambda i: (0, i)),      # y tile (1, 1024)
        compiler_params=pltpu.CompilerParams(
            dimension_semantics=("parallel",),
            vmem_limit_bytes=32 * 1024 * 1024,
        ),
    )(wb, x_t)
    return y_t[:, :B].reshape(B, OUT)


if __name__ == "__main__":
    key = jax.random.PRNGKey(0)
    kx, kw, kb, kx2 = jax.random.split(key, 4)

    B, IN, OUT = 8, 2, 1

    # Deterministic parameter init mirroring nn.Linear(2, 1):
    # uniform(-1/sqrt(in_features), 1/sqrt(in_features)); weight is (OUT, IN).
    bound = 1.0 / jnp.sqrt(jnp.float32(IN))
    w = jax.random.uniform(kw, (OUT, IN), jnp.float32, -bound, bound)
    b = jax.random.uniform(kb, (OUT,), jnp.float32, -bound, bound)

    # Small-batch (gridless) path.
    x = jax.random.normal(kx, (B, IN), jnp.float32)
    y = linear_pallas(x, w, b)
    jax.block_until_ready(y)
    y_ref = x @ w.T + b
    assert y.shape == (B, OUT)
    assert jnp.allclose(y, y_ref, atol=1e-5, rtol=1e-5)

    # Exercise the gridded large-B fallback (forced via a zero threshold);
    # non-multiple-of-tile batch checks the padding path too.
    B2 = 2048 + 7
    x2 = jax.random.normal(kx2, (B2, IN), jnp.float32)
    y2 = linear_pallas(x2, w, b, max_gridless_cols=0)
    jax.block_until_ready(y2)
    y2_ref = x2 @ w.T + b
    assert y2.shape == (B2, OUT)
    assert jnp.allclose(y2, y2_ref, atol=1e-5, rtol=1e-5)

    print("KERNEL_OK")
</pallas_src>

<mosaic_0001>
module attributes {stable_mosaic.version = 11 : i64} {
  func.func @linear_kernel(%arg0: memref<3xf32, #tpu.memory_space<smem>>, %arg1: memref<2x8xf32, #tpu.memory_space<vmem>>, %arg2: memref<1x8xf32, #tpu.memory_space<vmem>>) attributes {dimension_semantics = [], scalar_prefetch = 0 : i64, scratch_operands = 0 : i64, tpu.core_type = #tpu.core_type<tc>} {
    %c0 = arith.constant 0 : index
    %0 = memref.load %arg0[%c0] : memref<3xf32, #tpu.memory_space<smem>>
    %c1 = arith.constant 1 : index
    %1 = memref.load %arg0[%c1] : memref<3xf32, #tpu.memory_space<smem>>
    %c2 = arith.constant 2 : index
    %2 = memref.load %arg0[%c2] : memref<3xf32, #tpu.memory_space<smem>>
    %c0_0 = arith.constant 0 : index
    %c0_1 = arith.constant 0 : index
    %3 = vector.load %arg1[%c0_0, %c0_1] : memref<2x8xf32, #tpu.memory_space<vmem>>, vector<1x8xf32>
    %4 = vector.broadcast %0 : f32 to vector<1x8xf32>
    %5 = arith.mulf %3, %4 : vector<1x8xf32>
    %c1_2 = arith.constant 1 : index
    %c0_3 = arith.constant 0 : index
    %6 = vector.load %arg1[%c1_2, %c0_3] : memref<2x8xf32, #tpu.memory_space<vmem>>, vector<1x8xf32>
    %7 = vector.broadcast %1 : f32 to vector<1x8xf32>
    %8 = arith.mulf %6, %7 : vector<1x8xf32>
    %9 = arith.addf %5, %8 : vector<1x8xf32>
    %10 = vector.broadcast %2 : f32 to vector<1x8xf32>
    %11 = arith.addf %9, %10 : vector<1x8xf32>
    %c0_4 = arith.constant 0 : index
    %c0_5 = arith.constant 0 : index
    %12 = vector.load %arg2[%c0_4, %c0_5] : memref<1x8xf32, #tpu.memory_space<vmem>>, vector<1x8xf32>
    tpu.vector_store %arg2[%c0_4, %c0_5], %11 {strides = array<i32>} : memref<1x8xf32, #tpu.memory_space<vmem>>, vector<1x8xf32>,
    return
  }
}

</mosaic_0001>

<bundles_post_ra>
// kernel: tpu_custom_call.1
= control target key start
LH: loop header
LB: loop body
LE: loop exit
PB: predicated region body
PF: predicated region fallthrough
CT: control target
= control target key end

     0   :  { %7 = vsyncpa [#allocation5], 0  ;;  %s151_s0 = inlined_call_operand.hbm [shape: f32[3], index: 0, kind: input, shape index: {}]   ;;  %s152_s1 = inlined_call_operand.hbm [shape: f32[2,8], index: 1, kind: input, shape index: {}]   ;;  %s153_s2 = inlined_call_operand.hbm [shape: f32[1,8], index: 2, kind: output, shape index: {}]  }
   0x1   :  { %8 = vsyncpa [#allocation3], 0 }
   0x2   :  { %9 = vsyncpa [#allocation4], 0  ;;  %s124_s9 = smov [#allocation2]   ;;  %s125_s12 = smov [#allocation6]  }
   0x3   :  { %17 = dma.hbm_to_smem %s151_s0, 16, %s124_s9, [#allocation5]  }
   0x4   :  { %s24_s13 = sshll.u32 %s125_s12, 4  ;;  %s25_s13 = int_to_ptr.vmem [resolvable:$true] %s24_s13 }
   0x5   :  { %s86_s14 = scalar_lea.vmem %s25_s13, 32  ;;  %p91_p1 = scmp.lt.s32.totalorder %s25_s13, %s25_s13 }
   0x6   :  { %p87_p0 = scmp.ne.s32.totalorder %s25_s13, %s86_s14  ;;  %p92_p2 = scmp.lt.s32.totalorder %s86_s14, %s86_s14 }
   0x8   :  { %p93_p3 = por %p92_p2, %p91_p1 }
   0xa   :  { %p94_p4 = pnand %p93_p3, %p87_p0 }
   0xc   :  { %97 = shalt.err (!%p94_p4)
}
   0xd   :  { %27 = dma.hbm_to_vmem [thread:$0]  %s152_s1, 32, %s25_s13, [#allocation3]  }
   0xe   :  { %118 = dma.done.wait [#allocation5], 16  }
   0xf   :  { %119 = vsyncadd [#allocation5], 4294967280 }
  0x10   :  { %120 = dma.done.wait [#allocation3], 32  }
  0x11   :  { %121 = vsyncadd [#allocation3], 4294967264 }
  0x12   :  { %34 = sfence }
  0x13   :  { %s35_s0 = sld [smem:[#allocation2]]  ;;  %v38_v0 = vld [vmem:[#allocation6] sm:$0x1]  ;;  %v41_v1 = vld [vmem:[#allocation6 + $0x1] sm:$0x1]  ;;  %s126_s19 = smov [#allocation7]  }
  0x14   :  { %s65_s17 = sld [smem:[#allocation2 + $0x1]]  ;;  %s55_s20 = sshll.u32 %s126_s19, 4  ;;  %vm47_vm0 = vcmask 57344   ;;  %s56_s20 = int_to_ptr.vmem [resolvable:$true] %s55_s20 }
  0x15   :  { %s66_s18 = sld [smem:[#allocation2 + $0x2]]  ;;  %s98_s1 = scalar_lea.vmem %s56_s20, 16 }
  0x16   :  { %p99_p5 = scmp.ne.s32.totalorder %s56_s20, %s98_s1  ;;  %s102_s21 = scalar_lea.vmem %s56_s20, 32 }
  0x17   :  { %p103_p6 = scmp.lt.s32.totalorder %s56_s20, %s56_s20  ;;  %p104_p7 = scmp.lt.s32.totalorder %s102_s21, %s98_s1 }
  0x19   :  { %v39_v2 = vstv %s35_s0  ;;  %p105_p8 = por %p104_p7, %p103_p6 }
  0x1a   :  { %v40_v3 = vmul.f32 %v39_v2, %v38_v0  ;;  %v42_v4 = vstv %s65_s17 }
  0x1b   :  { %v43_v5 = vmul.f32 %v42_v4, %v41_v1  ;;  %v45_v6 = vstv %s66_s18  ;;  %p106_p9 = pnand %p105_p8, %p99_p5 }
  0x1d   :  { %v44_v7 = vadd.f32 %v43_v5, %v40_v3 }
  0x1f   :  { %v46_v8 = vadd.f32 %v45_v6, %v44_v7 }
  0x21   :  { %48 = vst.msk [vmem:[#allocation7] sm:$0x1] %vm47_vm0, %v46_v8 }
  0x22   :  { %109 = shalt.err (!%p106_p9)
}
  0x23   :  { %58 = dma.vmem_to_hbm [thread:$0]  %s56_s20, 16, %s153_s2, [#allocation4]  }
  0x24   :  { %122 = dma.done.wait [#allocation4], 16  }
  0x25   :  { %123 = vsyncadd [#allocation4], 4294967280 }
  0x26   :  { %62 = vsyncpa [#allocation3], 1 }
  0x27   :  { %63 = vsyncpa [#allocation4], 1 }
  0x28   :  { %64 = vsyncpa [#allocation5], 1 }

</bundles_post_ra>
